<compile_context>
chip_gen: v6e
topology: v6e:2x2x1
jax: 0.10.0
libtpu: 0.0.40
codegen_flags: <defaults>
</compile_context>

<pallas_src>
import jax
import jax.numpy as jnp
from jax.experimental import pallas as pl
from jax.experimental.pallas import tpu as pltpu


def dynamics_mlp_kernel(s_ref, a_ref, w1s_ref, w1a_ref, b1_ref,
                        w2_ref, b2_ref, clamp_ref, out_ref):
    # Linear 1 with in-kernel "concat": state@W1_s + action@W1_a + b1
    h = (jnp.dot(s_ref[...], w1s_ref[...], preferred_element_type=jnp.float32)
         + jnp.dot(a_ref[...], w1a_ref[...], preferred_element_type=jnp.float32)
         + b1_ref[...])
    # ReLU
    h = jnp.maximum(h, 0.0)
    # Linear 2 (BatchNorm already folded into w2/b2). Dropout: identity (eval).
    out = jnp.dot(h, w2_ref[...], preferred_element_type=jnp.float32) + b2_ref[...]
    # Per-column clamp: -inf on the mean half (no-op), 1e-6 on the std half.
    out_ref[...] = jnp.maximum(out, clamp_ref[...])


def init_params(key, input_dim, output_dim, hidden_dim):
    """Deterministic init matching DynamicsNetwork.__init__ (orthogonal W, zero b,
    fresh BatchNorm stats: gamma=1, beta=0, running_mean=0, running_var=1)."""
    k1, k2 = jax.random.split(key)
    ortho = jax.nn.initializers.orthogonal()
    w1_torch = ortho(k1, (hidden_dim, input_dim), jnp.float32)        # torch [out, in]
    w2_torch = ortho(k2, (2 * output_dim, hidden_dim), jnp.float32)   # torch [out, in]
    return dict(
        w1=w1_torch.T,                                                # [Din, H]
        b1=jnp.zeros((1, hidden_dim), jnp.float32),
        gamma=jnp.ones((1, hidden_dim), jnp.float32),
        beta=jnp.zeros((1, hidden_dim), jnp.float32),
        rm=jnp.zeros((1, hidden_dim), jnp.float32),
        rv=jnp.ones((1, hidden_dim), jnp.float32),
        w2=w2_torch.T,                                                # [H, 2*out]
        b2=jnp.zeros((1, 2 * output_dim), jnp.float32),
    )


def fold_params(params, state_dim):
    """Fold eval-mode BatchNorm into the second linear, split W1 for the
    in-kernel concat, and build the per-column clamp row.
    Done once at parameter-prep time, not per forward call."""
    eps = 1e-5
    s = params["gamma"] * jax.lax.rsqrt(params["rv"] + eps)           # [1, H]
    t = params["beta"] - params["rm"] * s                             # [1, H]
    w2f = params["w2"] * s.reshape(-1, 1)                             # [H, 2*out]
    b2f = params["b2"] + t @ params["w2"]                             # [1, 2*out]
    two_od = params["w2"].shape[1]
    od = two_od // 2
    clamp = jnp.concatenate(
        [jnp.full((1, od), -jnp.inf, jnp.float32),                    # mean: no clamp
         jnp.full((1, two_od - od), 1e-6, jnp.float32)],              # std: min 1e-6
        axis=1)
    return dict(
        w1_s=params["w1"][:state_dim, :],                             # [Sd, H]
        w1_a=params["w1"][state_dim:, :],                             # [Ad, H]
        b1=params["b1"],                                              # [1, H]
        w2=w2f,
        b2=b2f,
        clamp=clamp,                                                  # [1, 2*out]
    )


def dynamics_forward(state, action, fparams, output_dim):
    """Forward pass of DynamicsNetwork (dist=True). Returns (mean, std)."""
    state = jnp.asarray(state, jnp.float32)
    action = jnp.asarray(action, jnp.float32)
    if state.ndim == 1:
        state = state[None, :]
    if action.ndim == 1:
        action = action[None, :]

    B, Sd = state.shape
    Ad = action.shape[1]
    H = fparams["w1_s"].shape[1]
    two_od = fparams["w2"].shape[1]

    # Batch tiling: TB multiple of 8, up to 1024 rows; pad batch if needed.
    b8 = ((B + 7) // 8) * 8
    TB = min(1024, b8)
    Bp = ((b8 + TB - 1) // TB) * TB
    if Bp != B:
        pad = Bp - B
        state_p = jnp.pad(state, ((0, pad), (0, 0)))
        action_p = jnp.pad(action, ((0, pad), (0, 0)))
    else:
        state_p, action_p = state, action

    grid = (Bp // TB,)

    def act_spec(d):
        return pl.BlockSpec((TB, d), lambda i: (i, 0))

    def w_spec(shape):
        return pl.BlockSpec(shape, lambda i: (0, 0))      # VMEM-resident weights

    flops = 2 * Bp * ((Sd + Ad) * H + H * two_od)
    bytes_acc = 4 * (Bp * (Sd + Ad + two_od)
                     + (Sd + Ad) * H + H * two_od + H + 2 * two_od)

    out = pl.pallas_call(
        dynamics_mlp_kernel,
        grid=grid,
        in_specs=[act_spec(Sd), act_spec(Ad),
                  w_spec((Sd, H)), w_spec((Ad, H)), w_spec((1, H)),
                  w_spec((H, two_od)), w_spec((1, two_od)), w_spec((1, two_od))],
        out_specs=pl.BlockSpec((TB, two_od), lambda i: (i, 0)),
        out_shape=jax.ShapeDtypeStruct((Bp, two_od), jnp.float32),
        compiler_params=pltpu.CompilerParams(
            dimension_semantics=("parallel",)),
        cost_estimate=pl.CostEstimate(flops=flops, transcendentals=0,
                                      bytes_accessed=bytes_acc),
    )(state_p, action_p, fparams["w1_s"], fparams["w1_a"], fparams["b1"],
      fparams["w2"], fparams["b2"], fparams["clamp"])

    out = out[:B]
    return out[:, :output_dim], out[:, output_dim:]


def _reference_forward(state, action, params, output_dim):
    sa = jnp.concatenate([state, action], axis=-1).astype(jnp.float32)
    h = jnp.maximum(sa @ params["w1"] + params["b1"], 0.0)
    h = (h - params["rm"]) * jax.lax.rsqrt(params["rv"] + 1e-5) * params["gamma"] + params["beta"]
    out = h @ params["w2"] + params["b2"]
    return out[:, :output_dim], jnp.maximum(out[:, output_dim:], 1e-6)


if __name__ == "__main__":
    key = jax.random.PRNGKey(0)
    ks, ka, kp = jax.random.split(key, 3)

    batch, state_dim, action_dim = 2, 4, 2
    output_dim, hidden_dim = 4, 32
    input_dim = state_dim + action_dim

    state = jax.random.normal(ks, (batch, state_dim), jnp.float32)
    action = jax.random.normal(ka, (batch, action_dim), jnp.float32)
    params = init_params(kp, input_dim, output_dim, hidden_dim)
    fparams = fold_params(params, state_dim)

    mean, std = dynamics_forward(state, action, fparams, output_dim)
    jax.block_until_ready((mean, std))

    ref_mean, ref_std = _reference_forward(state, action, params, output_dim)
    assert mean.shape == (batch, output_dim) and std.shape == (batch, output_dim)
    assert bool(jnp.allclose(mean, ref_mean, atol=1e-5, rtol=1e-5))
    assert bool(jnp.allclose(std, ref_std, atol=1e-5, rtol=1e-5))
    assert bool(jnp.all(std >= 1e-6))

    print("KERNEL_OK")
</pallas_src>

<mosaic_0001>
module attributes {stable_mosaic.version = 11 : i64} {
  func.func @dynamics_mlp_kernel(%arg0: i32, %arg1: memref<8x4xf32, #tpu.memory_space<vmem>>, %arg2: memref<8x2xf32, #tpu.memory_space<vmem>>, %arg3: memref<4x32xf32, #tpu.memory_space<vmem>>, %arg4: memref<2x32xf32, #tpu.memory_space<vmem>>, %arg5: memref<1x32xf32, #tpu.memory_space<vmem>>, %arg6: memref<32x8xf32, #tpu.memory_space<vmem>>, %arg7: memref<1x8xf32, #tpu.memory_space<vmem>>, %arg8: memref<1x8xf32, #tpu.memory_space<vmem>>, %arg9: memref<8x8xf32, #tpu.memory_space<vmem>>) attributes {dimension_semantics = [#tpu.dimension_semantics<parallel>], iteration_bounds = array<i64: 1>, scalar_prefetch = 0 : i64, scratch_operands = 0 : i64, tpu.core_type = #tpu.core_type<tc>, window_params = [{transform_indices = @transform_0, window_bounds = array<i64: 8, 4>}, {transform_indices = @transform_1, window_bounds = array<i64: 8, 2>}, {pipeline_mode = #tpu.pipeline_mode<synchronous>, transform_indices = @transform_2, window_bounds = array<i64: 4, 32>}, {pipeline_mode = #tpu.pipeline_mode<synchronous>, transform_indices = @transform_3, window_bounds = array<i64: 2, 32>}, {pipeline_mode = #tpu.pipeline_mode<synchronous>, transform_indices = @transform_4, window_bounds = array<i64: 1, 32>}, {pipeline_mode = #tpu.pipeline_mode<synchronous>, transform_indices = @transform_5, window_bounds = array<i64: 32, 8>}, {pipeline_mode = #tpu.pipeline_mode<synchronous>, transform_indices = @transform_6, window_bounds = array<i64: 1, 8>}, {pipeline_mode = #tpu.pipeline_mode<synchronous>, transform_indices = @transform_7, window_bounds = array<i64: 1, 8>}, {transform_indices = @transform_8, window_bounds = array<i64: 8, 8>}]} {
    %c0 = arith.constant 0 : index
    %c0_0 = arith.constant 0 : index
    %0 = vector.load %arg1[%c0, %c0_0] : memref<8x4xf32, #tpu.memory_space<vmem>>, vector<8x4xf32>
    %c0_1 = arith.constant 0 : index
    %c0_2 = arith.constant 0 : index
    %1 = vector.load %arg3[%c0_1, %c0_2] : memref<4x32xf32, #tpu.memory_space<vmem>>, vector<4x32xf32>
    %cst = arith.constant dense<0.000000e+00> : vector<8x32xf32>
    %2 = tpu.matmul %0, %1, %cst {dimension_numbers = #tpu.dot_dimension_numbers<[1], [0], [0], [1], [0, 0, 1, 1], [], []>} : vector<8x4xf32>, vector<4x32xf32>, vector<8x32xf32> -> vector<8x32xf32>
    %c0_3 = arith.constant 0 : index
    %c0_4 = arith.constant 0 : index
    %3 = vector.load %arg2[%c0_3, %c0_4] : memref<8x2xf32, #tpu.memory_space<vmem>>, vector<8x2xf32>
    %c0_5 = arith.constant 0 : index
    %c0_6 = arith.constant 0 : index
    %4 = vector.load %arg4[%c0_5, %c0_6] : memref<2x32xf32, #tpu.memory_space<vmem>>, vector<2x32xf32>
    %cst_7 = arith.constant dense<0.000000e+00> : vector<8x32xf32>
    %5 = tpu.matmul %3, %4, %cst_7 {dimension_numbers = #tpu.dot_dimension_numbers<[1], [0], [0], [1], [0, 0, 1, 1], [], []>} : vector<8x2xf32>, vector<2x32xf32>, vector<8x32xf32> -> vector<8x32xf32>
    %6 = arith.addf %2, %5 : vector<8x32xf32>
    %c0_8 = arith.constant 0 : index
    %c0_9 = arith.constant 0 : index
    %7 = vector.load %arg5[%c0_8, %c0_9] : memref<1x32xf32, #tpu.memory_space<vmem>>, vector<1x32xf32>
    %8 = vector.broadcast %7 : vector<1x32xf32> to vector<8x32xf32>
    %9 = arith.addf %6, %8 : vector<8x32xf32>
    %cst_10 = arith.constant 0.000000e+00 : f32
    %10 = vector.broadcast %cst_10 : f32 to vector<8x32xf32>
    %11 = arith.maximumf %9, %10 : vector<8x32xf32>
    %c0_11 = arith.constant 0 : index
    %c0_12 = arith.constant 0 : index
    %12 = vector.load %arg6[%c0_11, %c0_12] : memref<32x8xf32, #tpu.memory_space<vmem>>, vector<32x8xf32>
    %cst_13 = arith.constant dense<0.000000e+00> : vector<8x8xf32>
    %13 = tpu.matmul %11, %12, %cst_13 {dimension_numbers = #tpu.dot_dimension_numbers<[1], [0], [0], [1], [0, 0, 1, 1], [], []>} : vector<8x32xf32>, vector<32x8xf32>, vector<8x8xf32> -> vector<8x8xf32>
    %c0_14 = arith.constant 0 : index
    %c0_15 = arith.constant 0 : index
    %14 = vector.load %arg7[%c0_14, %c0_15] : memref<1x8xf32, #tpu.memory_space<vmem>>, vector<1x8xf32>
    %15 = vector.broadcast %14 : vector<1x8xf32> to vector<8x8xf32>
    %16 = arith.addf %13, %15 : vector<8x8xf32>
    %c0_16 = arith.constant 0 : index
    %c0_17 = arith.constant 0 : index
    %17 = vector.load %arg8[%c0_16, %c0_17] : memref<1x8xf32, #tpu.memory_space<vmem>>, vector<1x8xf32>
    %18 = vector.broadcast %17 : vector<1x8xf32> to vector<8x8xf32>
    %19 = arith.maximumf %16, %18 : vector<8x8xf32>
    %c0_18 = arith.constant 0 : index
    %c0_19 = arith.constant 0 : index
    %20 = vector.load %arg9[%c0_18, %c0_19] : memref<8x8xf32, #tpu.memory_space<vmem>>, vector<8x8xf32>
    tpu.vector_store %arg9[%c0_18, %c0_19], %19 {strides = array<i32>} : memref<8x8xf32, #tpu.memory_space<vmem>>, vector<8x8xf32>,
    return
  }
  func.func @transform_0(%arg0: i32) -> (i32, i32) {
    %c0_i32 = arith.constant 0 : i32
    %c0_i32_0 = arith.constant 0 : i32
    return %arg0, %c0_i32 : i32, i32
  }
  func.func @transform_1(%arg0: i32) -> (i32, i32) {
    %c0_i32 = arith.constant 0 : i32
    %c0_i32_0 = arith.constant 0 : i32
    return %arg0, %c0_i32 : i32, i32
  }
  func.func @transform_2(%arg0: i32) -> (i32, i32) {
    %c0_i32 = arith.constant 0 : i32
    %c0_i32_0 = arith.constant 0 : i32
    %c0_i32_1 = arith.constant 0 : i32
    return %c0_i32, %c0_i32_0 : i32, i32
  }
  func.func @transform_3(%arg0: i32) -> (i32, i32) {
    %c0_i32 = arith.constant 0 : i32
    %c0_i32_0 = arith.constant 0 : i32
    %c0_i32_1 = arith.constant 0 : i32
    return %c0_i32, %c0_i32_0 : i32, i32
  }
  func.func @transform_4(%arg0: i32) -> (i32, i32) {
    %c0_i32 = arith.constant 0 : i32
    %c0_i32_0 = arith.constant 0 : i32
    %c0_i32_1 = arith.constant 0 : i32
    return %c0_i32, %c0_i32_0 : i32, i32
  }
  func.func @transform_5(%arg0: i32) -> (i32, i32) {
    %c0_i32 = arith.constant 0 : i32
    %c0_i32_0 = arith.constant 0 : i32
    %c0_i32_1 = arith.constant 0 : i32
    return %c0_i32, %c0_i32_0 : i32, i32
  }
  func.func @transform_6(%arg0: i32) -> (i32, i32) {
    %c0_i32 = arith.constant 0 : i32
    %c0_i32_0 = arith.constant 0 : i32
    %c0_i32_1 = arith.constant 0 : i32
    return %c0_i32, %c0_i32_0 : i32, i32
  }
  func.func @transform_7(%arg0: i32) -> (i32, i32) {
    %c0_i32 = arith.constant 0 : i32
    %c0_i32_0 = arith.constant 0 : i32
    %c0_i32_1 = arith.constant 0 : i32
    return %c0_i32, %c0_i32_0 : i32, i32
  }
  func.func @transform_8(%arg0: i32) -> (i32, i32) {
    %c0_i32 = arith.constant 0 : i32
    %c0_i32_0 = arith.constant 0 : i32
    return %arg0, %c0_i32 : i32, i32
  }
}

</mosaic_0001>

<bundles_post_ra>
// kernel: tpu_custom_call.1
= control target key start
LH: loop header
LB: loop body
LE: loop exit
PB: predicated region body
PF: predicated region fallthrough
CT: control target
= control target key end

     0   :  { %vm38_vm0 = vcmask 1041408   ;;  %v371_v2 = vmov 0.0   ;;  %vm372_vm1 = vmmov 0   ;;  %vm34_vm2 = vcmask 15360   ;;  %s455_s0 = inlined_call_operand.vmem [shape: f32[8,4], index: 0, kind: input, shape index: {}]   ;;  %s456_s1 = inlined_call_operand.vmem [shape: f32[8,2], index: 1, kind: input, shape index: {}]   ;;  %s457_s2 = inlined_call_operand.vmem [shape: f32[4,32], index: 2, kind: input, shape index: {}]   ;;  %s458_s3 = inlined_call_operand.vmem [shape: f32[2,32], index: 3, kind: input, shape index: {}]   ;;  %s459_s4 = inlined_call_operand.vmem [shape: f32[1,32], index: 4, kind: input, shape index: {}]   ;;  %s460_s5 = inlined_call_operand.vmem [shape: f32[32,8], index: 5, kind: input, shape index: {}]   ;;  %s461_s6 = inlined_call_operand.vmem [shape: f32[1,8], index: 6, kind: input, shape index: {}]   ;;  %s462_s7 = inlined_call_operand.vmem [shape: f32[1,8], index: 7, kind: input, shape index: {}]   ;;  %s463_s8 = inlined_call_operand.hbm [shape: f32[8,8], index: 8, kind: output, shape index: {}]  }
   0x1   :  { %v33_v0 = vld [vmem:[%s458_s3] sm:$0x3]  ;;  %325 = vmatprep.subr.mxu1 %v371_v2  ;;  %327 = vmatprep.mubr.msk.f32.mxu1 %vm372_vm1, %v371_v2  ;;  %vm116_vm3 = vcmask 1043456  }
   0x2   :  { %v32_v1 = vld [vmem:[%s456_s1] sm:$0xff]  ;;  %326 = vmatpush3.msk.msra.mxu1 %vm38_vm0, %v33_v0  ;;  %335 = vmatprep.subr.mxu0 %v371_v2 }
   0x3   :  { %v31_v3 = vld [vmem:[%s457_s2] sm:$0xf] }
   0x4   :  { %13 = vsyncpa [#allocation3], 0  ;;  %328 = vmatmul.mubr.msk.f32.vlgmr.msra.gmra.mxu1 %vm34_vm2, %v32_v1  ;;  %330 = vmatprep.subr.mxu1 %v371_v2  ;;  %v30_v4 = vld [vmem:[%s455_s0] sm:$0xff]  ;;  %vm112_vm4 = vcmask 31744   ;;  %v202_v5 = vld [vmem:[%s460_s5 + $0x18] sm:$0xff]  ;;  %vm210_vm5 = vcmask 261120  }
   0x5   :  { %331 = vmatpush3.msk.msra.mxu1 %vm116_vm3, %v31_v3  ;;  %332 = vmatprep.mubr.msk.f32.mxu1 %vm372_vm1, %v371_v2  ;;  %v201_v6 = vld [vmem:[%s460_s5 + $0x10] sm:$0xff]  ;;  %v200_v7 = vld [vmem:[%s460_s5 + $0x8] sm:$0xff]  ;;  %v199_v8 = vld [vmem:[%s460_s5] sm:$0xff]  ;;  %s373_s22 = smov [#allocation2]   ;;  %vm292_vm6 = vcmask 64512  }
   0x6   :  { %343 = vmatprep.mubr.msk.f32.mxu0 %vm372_vm1, %v371_v2  ;;  %336 = vmatpush3.msra.mxu0 %v202_v5  ;;  %v312_v12 = vld [vmem:[%s459_s4] ss:$0 sm:$0xff]  ;;  %s300_s23 = sshll.u32 %s373_s22, 4  ;;  %s301_s23 = int_to_ptr.vmem [resolvable:$true] %s300_s23 }
   0x7   :  { %337 = vmatprep.subr.mxu0 %v371_v2  ;;  %v313_v17 = vld [vmem:[%s461_s6] ss:$0 sm:$0xff]  ;;  %s349_s4 = scalar_lea.vmem %s301_s23, 128  ;;  %p354_p1 = scmp.lt.s32.totalorder %s301_s23, %s301_s23 }
   0x8   :  { %333 = vmatmul.mubr.msk.f32.vlgmr.msra.gmra.mxu1 %vm112_vm4, %v30_v4  ;;  %338 = vmatpush3.msra.mxu0 %v201_v6  ;;  %v315_v19 = vld [vmem:[%s462_s7] ss:$0 sm:$0xff]  ;;  %p350_p0 = scmp.ne.s32.totalorder %s301_s23, %s349_s4  ;;  %p355_p2 = scmp.lt.s32.totalorder %s349_s4, %s349_s4 }
   0x9   :  { %339 = vmatprep.subr.mxu0 %v371_v2 }
   0xa   :  { %340 = vmatpush3.msra.mxu0 %v200_v7  ;;  %p356_p3 = por %p355_p2, %p354_p1 }
   0xb   :  { %341 = vmatprep.subr.mxu0 %v371_v2 }
   0xc   :  { %342 = vmatpush3.msra.mxu0 %v199_v8  ;;  %p357_p4 = pnand %p356_p3, %p350_p0 }
  0xc4   :  { %v108_v9 = vpop.f32.mrf.mxu1 }
  0xc6   :  { %v329_v10 = vpop.f32.mrf.mxu1 }
  0xc8   :  { %v186_v11 = vpop.f32.mrf.mxu1 }
  0xc9   :  { %v187_v13 = vadd.f32 %v186_v11, %v108_v9 }
  0xca   :  { %v334_v14 = vpop.f32.mrf.mxu1 }
  0xcb   :  { %v197_v15 = vadd.f32 %v312_v12, %v187_v13 }
  0xcd   :  { %v198_v16 = vmax.f32 %v197_v15, 0.0 }
  0xcf   :  { %344 = vmatmul.mubr.msk.f32.vlgmr.msra.gmra.mxu0 %vm210_vm5, %v198_v16 }
 0x18f   :  { %v280_v18 = vpop.f32.mrf.mxu0 }
 0x190   :  { %v281_v20 = vadd.f32 %v313_v17, %v280_v18 }
 0x191   :  { %v345_v21 = vpop.f32.mrf.mxu0 }
 0x192   :  { %v291_v22 = vmax.f32 %v281_v20, %v315_v19 }
 0x194   :  { %293 = vst.msk [vmem:[#allocation2] sm:$0xff] %vm292_vm6, %v291_v22 }
 0x195   :  { %360 = shalt.err (!%p357_p4)
}
 0x196   :  { %303 = dma.vmem_to_hbm [thread:$0]  %s301_s23, 128, %s463_s8, [#allocation3]  }
 0x197   :  { %369 = dma.done.wait [#allocation3], 128  }
 0x198   :  { %370 = vsyncadd [#allocation3], 4294967168 }
 0x199   :  { %307 = vsyncpa [#allocation3], 1 }

</bundles_post_ra>
